<compile_context>
chip_gen: v7x
topology: tpu7x:2x2x1
jax: 0.10.0
libtpu: 0.0.40
codegen_flags: <defaults>
</compile_context>

<pallas_src>
import functools

import jax
import jax.numpy as jnp
from jax.experimental import pallas as pl
from jax.experimental.pallas import tpu as pltpu

LANE = 128  # TPU vreg lane width


def _round_up(x, m):
    return (x + m - 1) // m * m


# --------------------------------------------------------------------------
# Kernel: single invocation runs embedding gather, batched input projection,
# and the serial GRU recurrence (hidden carried in vregs).
# --------------------------------------------------------------------------
def gru_seq_kernel(seq_len, hp,
                   tok_ref,                        # (T, 1)  int32
                   emb_ref,                        # (Vp, Hp) f32  (VMEM-resident table)
                   wih_ref, whh_ref,               # (Hp, 3Hp) f32 fused, transposed
                   bih_ref, bhh_ref,               # (1, 3Hp) f32 fused
                   h0_ref,                         # (1, Hp) f32
                   out_ref,                        # (T, Hp) f32 output block
                   gi_scratch):                    # (T, 3Hp) f32 VMEM scratch
    vp = emb_ref.shape[0]

    # ---- Phase 1: gather all T embedding rows with one one-hot MXU matmul ----
    toks = tok_ref[...]                                             # (T, 1) int32
    col = jax.lax.broadcasted_iota(jnp.int32, (seq_len, vp), 1)     # (T, Vp)
    onehot = (toks == col).astype(jnp.float32)                      # (T, Vp)
    x_all = jnp.dot(onehot, emb_ref[...],
                    preferred_element_type=jnp.float32)             # (T, Hp)

    # ---- Phase 2: batched input projection for ALL timesteps (M=T matmul) ----
    gi_scratch[...] = (jnp.dot(x_all, wih_ref[...],
                               preferred_element_type=jnp.float32)
                       + bih_ref[...])                              # (T, 3Hp)

    # ---- Phase 3: serial recurrence, hidden state carried in vregs ----------
    whh = whh_ref[...]
    bhh = bhh_ref[...]

    def step(t, h):
        gi = gi_scratch[pl.ds(t, 1), :]                             # (1, 3Hp)
        gh = jnp.dot(h, whh, preferred_element_type=jnp.float32) + bhh
        r = jax.nn.sigmoid(gi[:, 0:hp] + gh[:, 0:hp])
        z = jax.nn.sigmoid(gi[:, hp:2 * hp] + gh[:, hp:2 * hp])
        n = jnp.tanh(gi[:, 2 * hp:3 * hp] + r * gh[:, 2 * hp:3 * hp])
        h_new = (1.0 - z) * n + z * h
        out_ref[pl.ds(t, 1), :] = h_new.astype(out_ref.dtype)
        return h_new

    jax.lax.fori_loop(0, seq_len, step, h0_ref[...],
                      unroll=True if seq_len <= 32 else False)


@functools.lru_cache(maxsize=None)
def _build_gru_seq_call(seq_len, vp, hp):
    kernel = functools.partial(gru_seq_kernel, seq_len, hp)
    call = pl.pallas_call(
        kernel,
        out_shape=jax.ShapeDtypeStruct((seq_len, hp), jnp.float32),
        grid=(1,),
        in_specs=[
            pl.BlockSpec((seq_len, 1), lambda i: (0, 0)),      # token ids
            pl.BlockSpec((vp, hp), lambda i: (0, 0)),          # embedding table
            pl.BlockSpec((hp, 3 * hp), lambda i: (0, 0)),      # fused W_ih^T
            pl.BlockSpec((hp, 3 * hp), lambda i: (0, 0)),      # fused W_hh^T
            pl.BlockSpec((1, 3 * hp), lambda i: (0, 0)),       # fused b_ih
            pl.BlockSpec((1, 3 * hp), lambda i: (0, 0)),       # fused b_hh
            pl.BlockSpec((1, hp), lambda i: (0, 0)),           # h0
        ],
        out_specs=pl.BlockSpec((seq_len, hp), lambda i: (0, 0)),
        scratch_shapes=[pltpu.VMEM((seq_len, 3 * hp), jnp.float32)],
        compiler_params=pltpu.CompilerParams(
            dimension_semantics=("arbitrary",)),
    )
    return jax.jit(call)


# --------------------------------------------------------------------------
# Parameter construction (matches nn.Embedding + nn.GRU) and one-time relayout.
# --------------------------------------------------------------------------
def init_params(key, input_size, hidden_size):
    k_emb, k_wih, k_whh, k_bih, k_bhh = jax.random.split(key, 5)
    bound = 1.0 / jnp.sqrt(jnp.float32(hidden_size))
    return {
        "hidden_size": hidden_size,
        "embedding": jax.random.normal(k_emb, (input_size, hidden_size), jnp.float32),
        "w_ih": jax.random.uniform(k_wih, (3 * hidden_size, hidden_size), jnp.float32, -bound, bound),
        "w_hh": jax.random.uniform(k_whh, (3 * hidden_size, hidden_size), jnp.float32, -bound, bound),
        "b_ih": jax.random.uniform(k_bih, (3 * hidden_size,), jnp.float32, -bound, bound),
        "b_hh": jax.random.uniform(k_bhh, (3 * hidden_size,), jnp.float32, -bound, bound),
    }


def prepare_params(params):
    """ONE-TIME re-layout: transpose, fuse gates, pad to lane width 128."""
    H = params["hidden_size"]
    Hp = _round_up(H, LANE)
    V = params["embedding"].shape[0]
    Vp = _round_up(V, LANE)

    emb_p = jnp.zeros((Vp, Hp), jnp.float32).at[:V, :H].set(params["embedding"])

    def fuse_weight(w):       # (3H, H) PyTorch layout -> (Hp, 3*Hp) fused, transposed, padded
        out = jnp.zeros((Hp, 3 * Hp), jnp.float32)
        for g in range(3):    # gate order r, z, n (PyTorch)
            out = out.at[:H, g * Hp:g * Hp + H].set(w[g * H:(g + 1) * H, :].T)
        return out

    def fuse_bias(b):         # (3H,) -> (1, 3*Hp)
        out = jnp.zeros((1, 3 * Hp), jnp.float32)
        for g in range(3):
            out = out.at[0, g * Hp:g * Hp + H].set(b[g * H:(g + 1) * H])
        return out

    # NOTE: on v6e/v7x the fused weights could be stored bf16 (f32 accumulate)
    # to halve weight DMA/VMEM at production H; kept f32 for exact agreement here.
    return {
        "H": H,
        "Hp": Hp,
        "Vp": Vp,
        "embedding_p": emb_p,
        "w_ih_t": fuse_weight(params["w_ih"]),
        "w_hh_t": fuse_weight(params["w_hh"]),
        "b_ih_p": fuse_bias(params["b_ih"]),
        "b_hh_p": fuse_bias(params["b_hh"]),
    }


# --------------------------------------------------------------------------
# Forward wrappers.
# --------------------------------------------------------------------------
def encoder_rnn_forward_sequence(tokens, hidden0, prepared):
    """Runs T encoder timesteps in ONE pallas_call.

    tokens : (T,) int32 token ids
    hidden0: (1, 1, H) float32 initial hidden state
    returns (outputs (T, 1, H), hidden (1, 1, H))
    """
    H, Hp, Vp = prepared["H"], prepared["Hp"], prepared["Vp"]
    T = int(tokens.shape[0])
    h0_p = jnp.zeros((1, Hp), jnp.float32).at[:, :H].set(
        hidden0.reshape(1, H).astype(jnp.float32))
    call = _build_gru_seq_call(T, Vp, Hp)
    out_p = call(tokens.astype(jnp.int32).reshape(T, 1),
                 prepared["embedding_p"],
                 prepared["w_ih_t"], prepared["w_hh_t"],
                 prepared["b_ih_p"], prepared["b_hh_p"],
                 h0_p)
    # Downstream consumers could keep the padded (T, Hp) layout; we slice here
    # only to match the PyTorch (T, 1, H) output contract for validation.
    outputs = out_p[:, :H].reshape(T, 1, H)
    hidden = outputs[-1].reshape(1, 1, H)
    return outputs, hidden


def encoder_rnn_forward(token, hidden, prepared):
    """Single-step forward matching EncoderRNN.forward -> (output, hidden), each (1,1,H)."""
    tokens = jnp.asarray(token, jnp.int32).reshape(1)
    outputs, hidden_new = encoder_rnn_forward_sequence(tokens, hidden, prepared)
    return outputs.reshape(1, 1, prepared["H"]), hidden_new


# --------------------------------------------------------------------------
# Pure-JAX reference (mirrors torch.nn.GRU) for validation.
# --------------------------------------------------------------------------
def _reference_step(params, h, tok):
    H = params["hidden_size"]
    x = params["embedding"][tok].reshape(1, H)
    gi = x @ params["w_ih"].T + params["b_ih"]
    gh = h @ params["w_hh"].T + params["b_hh"]
    i_r, i_z, i_n = gi[:, 0:H], gi[:, H:2 * H], gi[:, 2 * H:]
    h_r, h_z, h_n = gh[:, 0:H], gh[:, H:2 * H], gh[:, 2 * H:]
    r = jax.nn.sigmoid(i_r + h_r)
    z = jax.nn.sigmoid(i_z + h_z)
    n = jnp.tanh(i_n + r * h_n)
    h_new = (1.0 - z) * n + z * h
    return h_new, h_new


def _reference_sequence(tokens, hidden0, params):
    H = params["hidden_size"]
    h0 = hidden0.reshape(1, H)
    h_final, outs = jax.lax.scan(lambda h, t: _reference_step(params, h, t), h0, tokens)
    return outs.reshape(-1, 1, H), h_final.reshape(1, 1, H)


if __name__ == "__main__":
    INPUT_SIZE = 64     # vocab size
    HIDDEN_SIZE = 32
    SEQ_LEN = 8

    key = jax.random.PRNGKey(0)
    params = init_params(key, INPUT_SIZE, HIDDEN_SIZE)
    prepared = prepare_params(params)     # one-time weight re-layout

    hidden0 = jnp.zeros((1, 1, HIDDEN_SIZE), jnp.float32)   # get_initial_hidden_state()

    # --- single-step forward (exact EncoderRNN.forward semantics) ---
    token = jnp.int32(5)
    out1, hid1 = encoder_rnn_forward(token, hidden0, prepared)
    out1 = jax.block_until_ready(out1)
    hid1 = jax.block_until_ready(hid1)
    ref_out1, ref_hid1 = _reference_sequence(jnp.array([5], jnp.int32), hidden0, params)
    assert out1.shape == (1, 1, HIDDEN_SIZE) and hid1.shape == (1, 1, HIDDEN_SIZE)
    assert jnp.allclose(out1, ref_out1, atol=1e-5, rtol=1e-5), "single-step output mismatch"
    assert jnp.allclose(hid1, ref_hid1, atol=1e-5, rtol=1e-5), "single-step hidden mismatch"

    # --- full encoder loop: T timesteps in ONE kernel invocation ---
    tokens = jax.random.randint(jax.random.PRNGKey(1), (SEQ_LEN,), 0, INPUT_SIZE, jnp.int32)
    outs, hid = encoder_rnn_forward_sequence(tokens, hidden0, prepared)
    outs = jax.block_until_ready(outs)
    hid = jax.block_until_ready(hid)
    ref_outs, ref_hid = _reference_sequence(tokens, hidden0, params)
    assert outs.shape == (SEQ_LEN, 1, HIDDEN_SIZE) and hid.shape == (1, 1, HIDDEN_SIZE)
    assert jnp.allclose(outs, ref_outs, atol=1e-5, rtol=1e-5), "sequence outputs mismatch"
    assert jnp.allclose(hid, ref_hid, atol=1e-5, rtol=1e-5), "sequence hidden mismatch"

    # Call a second time to confirm the cached/jitted kernel path is reused.
    outs2, _ = encoder_rnn_forward_sequence(tokens, hidden0, prepared)
    jax.block_until_ready(outs2)
    assert jnp.allclose(outs2, ref_outs, atol=1e-5, rtol=1e-5)

    print("KERNEL_OK")
</pallas_src>

<mosaic_0001>
module attributes {stable_mosaic.version = 11 : i64} {
  func.func @gru_seq_kernel(%arg0: i32, %arg1: memref<1x1xi32, #tpu.memory_space<vmem>>, %arg2: memref<128x128xf32, #tpu.memory_space<vmem>>, %arg3: memref<128x384xf32, #tpu.memory_space<vmem>>, %arg4: memref<128x384xf32, #tpu.memory_space<vmem>>, %arg5: memref<1x384xf32, #tpu.memory_space<vmem>>, %arg6: memref<1x384xf32, #tpu.memory_space<vmem>>, %arg7: memref<1x128xf32, #tpu.memory_space<vmem>>, %arg8: memref<1x128xf32, #tpu.memory_space<vmem>>, %arg9: memref<1x384xf32, #tpu.memory_space<vmem>>) attributes {dimension_semantics = [#tpu.dimension_semantics<arbitrary>], iteration_bounds = array<i64: 1>, scalar_prefetch = 0 : i64, scratch_operands = 1 : i64, tpu.core_type = #tpu.core_type<tc>, window_params = [{pipeline_mode = #tpu.pipeline_mode<synchronous>, transform_indices = @transform_0, window_bounds = array<i64: 1, 1>}, {pipeline_mode = #tpu.pipeline_mode<synchronous>, transform_indices = @transform_1, window_bounds = array<i64: 128, 128>}, {pipeline_mode = #tpu.pipeline_mode<synchronous>, transform_indices = @transform_2, window_bounds = array<i64: 128, 384>}, {pipeline_mode = #tpu.pipeline_mode<synchronous>, transform_indices = @transform_3, window_bounds = array<i64: 128, 384>}, {pipeline_mode = #tpu.pipeline_mode<synchronous>, transform_indices = @transform_4, window_bounds = array<i64: 1, 384>}, {pipeline_mode = #tpu.pipeline_mode<synchronous>, transform_indices = @transform_5, window_bounds = array<i64: 1, 384>}, {pipeline_mode = #tpu.pipeline_mode<synchronous>, transform_indices = @transform_6, window_bounds = array<i64: 1, 128>}, {pipeline_mode = #tpu.pipeline_mode<synchronous>, transform_indices = @transform_7, window_bounds = array<i64: 1, 128>}]} {
    %c0 = arith.constant 0 : index
    %c0_0 = arith.constant 0 : index
    %0 = vector.load %arg1[%c0, %c0_0] : memref<1x1xi32, #tpu.memory_space<vmem>>, vector<1x1xi32>
    %1 = tpu.iota {dimensions = array<i32: 1>} : vector<1x128xi32>
    %2 = vector.broadcast %0 : vector<1x1xi32> to vector<1x128xi32>
    %3 = arith.cmpi eq, %2, %1 : vector<1x128xi32>
    %4 = arith.extui %3 : vector<1x128xi1> to vector<1x128xi32>
    %5 = arith.sitofp %4 : vector<1x128xi32> to vector<1x128xf32>
    %c0_1 = arith.constant 0 : index
    %c0_2 = arith.constant 0 : index
    %6 = vector.load %arg2[%c0_1, %c0_2] : memref<128x128xf32, #tpu.memory_space<vmem>>, vector<128x128xf32>
    %cst = arith.constant dense<0.000000e+00> : vector<1x128xf32>
    %7 = tpu.matmul %5, %6, %cst {dimension_numbers = #tpu.dot_dimension_numbers<[1], [0], [0], [1], [0, 0, 1, 1], [], []>} : vector<1x128xf32>, vector<128x128xf32>, vector<1x128xf32> -> vector<1x128xf32>
    %c0_3 = arith.constant 0 : index
    %c0_4 = arith.constant 0 : index
    %8 = vector.load %arg3[%c0_3, %c0_4] : memref<128x384xf32, #tpu.memory_space<vmem>>, vector<128x384xf32>
    %cst_5 = arith.constant dense<0.000000e+00> : vector<1x384xf32>
    %9 = tpu.matmul %7, %8, %cst_5 {dimension_numbers = #tpu.dot_dimension_numbers<[1], [0], [0], [1], [0, 0, 1, 1], [], []>} : vector<1x128xf32>, vector<128x384xf32>, vector<1x384xf32> -> vector<1x384xf32>
    %c0_6 = arith.constant 0 : index
    %c0_7 = arith.constant 0 : index
    %10 = vector.load %arg5[%c0_6, %c0_7] : memref<1x384xf32, #tpu.memory_space<vmem>>, vector<1x384xf32>
    %11 = arith.addf %9, %10 : vector<1x384xf32>
    %c0_8 = arith.constant 0 : index
    %c0_9 = arith.constant 0 : index
    %12 = vector.load %arg9[%c0_8, %c0_9] : memref<1x384xf32, #tpu.memory_space<vmem>>, vector<1x384xf32>
    tpu.vector_store %arg9[%c0_8, %c0_9], %11 {strides = array<i32>} : memref<1x384xf32, #tpu.memory_space<vmem>>, vector<1x384xf32>,
    %c0_10 = arith.constant 0 : index
    %c0_11 = arith.constant 0 : index
    %13 = vector.load %arg4[%c0_10, %c0_11] : memref<128x384xf32, #tpu.memory_space<vmem>>, vector<128x384xf32>
    %c0_12 = arith.constant 0 : index
    %c0_13 = arith.constant 0 : index
    %14 = vector.load %arg6[%c0_12, %c0_13] : memref<1x384xf32, #tpu.memory_space<vmem>>, vector<1x384xf32>
    %c0_14 = arith.constant 0 : index
    %c0_15 = arith.constant 0 : index
    %15 = vector.load %arg7[%c0_14, %c0_15] : memref<1x128xf32, #tpu.memory_space<vmem>>, vector<1x128xf32>
    %c0_i32 = arith.constant 0 : i32
    %16 = arith.index_cast %c0_i32 : i32 to index
    %c0_16 = arith.constant 0 : index
    %17 = vector.load %arg9[%16, %c0_16] : memref<1x384xf32, #tpu.memory_space<vmem>>, vector<1x384xf32>
    %cst_17 = arith.constant dense<0.000000e+00> : vector<1x384xf32>
    %18 = tpu.matmul %15, %13, %cst_17 {dimension_numbers = #tpu.dot_dimension_numbers<[1], [0], [0], [1], [0, 0, 1, 1], [], []>} : vector<1x128xf32>, vector<128x384xf32>, vector<1x384xf32> -> vector<1x384xf32>
    %19 = arith.addf %18, %14 : vector<1x384xf32>
    %20 = vector.extract_strided_slice %17 {offsets = [0, 0], sizes = [1, 128], strides = [1, 1]} : vector<1x384xf32> to vector<1x128xf32>
    %21 = vector.extract_strided_slice %19 {offsets = [0, 0], sizes = [1, 128], strides = [1, 1]} : vector<1x384xf32> to vector<1x128xf32>
    %22 = arith.addf %20, %21 : vector<1x128xf32>
    %23 = arith.negf %22 : vector<1x128xf32>
    %24 = math.exp %23 : vector<1x128xf32>
    %cst_18 = arith.constant 1.000000e+00 : f32
    %25 = vector.broadcast %cst_18 : f32 to vector<1x128xf32>
    %26 = arith.addf %25, %24 : vector<1x128xf32>
    %27 = arith.divf %25, %26 : vector<1x128xf32>
    %28 = vector.extract_strided_slice %17 {offsets = [0, 128], sizes = [1, 128], strides = [1, 1]} : vector<1x384xf32> to vector<1x128xf32>
    %29 = vector.extract_strided_slice %19 {offsets = [0, 128], sizes = [1, 128], strides = [1, 1]} : vector<1x384xf32> to vector<1x128xf32>
    %30 = arith.addf %28, %29 : vector<1x128xf32>
    %31 = arith.negf %30 : vector<1x128xf32>
    %32 = math.exp %31 : vector<1x128xf32>
    %cst_19 = arith.constant 1.000000e+00 : f32
    %33 = vector.broadcast %cst_19 : f32 to vector<1x128xf32>
    %34 = arith.addf %33, %32 : vector<1x128xf32>
    %35 = arith.divf %33, %34 : vector<1x128xf32>
    %36 = vector.extract_strided_slice %17 {offsets = [0, 256], sizes = [1, 128], strides = [1, 1]} : vector<1x384xf32> to vector<1x128xf32>
    %37 = vector.extract_strided_slice %19 {offsets = [0, 256], sizes = [1, 128], strides = [1, 1]} : vector<1x384xf32> to vector<1x128xf32>
    %38 = arith.mulf %27, %37 : vector<1x128xf32>
    %39 = arith.addf %36, %38 : vector<1x128xf32>
    %40 = math.tanh %39 : vector<1x128xf32>
    %cst_20 = arith.constant 1.000000e+00 : f32
    %41 = vector.broadcast %cst_20 : f32 to vector<1x128xf32>
    %42 = arith.subf %41, %35 : vector<1x128xf32>
    %43 = arith.mulf %42, %40 : vector<1x128xf32>
    %44 = arith.mulf %35, %15 : vector<1x128xf32>
    %45 = arith.addf %43, %44 : vector<1x128xf32>
    %46 = arith.index_cast %c0_i32 : i32 to index
    %c0_21 = arith.constant 0 : index
    %47 = vector.load %arg8[%46, %c0_21] : memref<1x128xf32, #tpu.memory_space<vmem>>, vector<1x128xf32>
    tpu.vector_store %arg8[%46, %c0_21], %45 {strides = array<i32>} : memref<1x128xf32, #tpu.memory_space<vmem>>, vector<1x128xf32>,
    %c1_i32 = arith.constant 1 : i32
    return
  }
  func.func @transform_0(%arg0: i32) -> (i32, i32) {
    %c0_i32 = arith.constant 0 : i32
    %c0_i32_0 = arith.constant 0 : i32
    %c0_i32_1 = arith.constant 0 : i32
    return %c0_i32, %c0_i32_0 : i32, i32
  }
  func.func @transform_1(%arg0: i32) -> (i32, i32) {
    %c0_i32 = arith.constant 0 : i32
    %c0_i32_0 = arith.constant 0 : i32
    %c0_i32_1 = arith.constant 0 : i32
    return %c0_i32, %c0_i32_0 : i32, i32
  }
  func.func @transform_2(%arg0: i32) -> (i32, i32) {
    %c0_i32 = arith.constant 0 : i32
    %c0_i32_0 = arith.constant 0 : i32
    %c0_i32_1 = arith.constant 0 : i32
    return %c0_i32, %c0_i32_0 : i32, i32
  }
  func.func @transform_3(%arg0: i32) -> (i32, i32) {
    %c0_i32 = arith.constant 0 : i32
    %c0_i32_0 = arith.constant 0 : i32
    %c0_i32_1 = arith.constant 0 : i32
    return %c0_i32, %c0_i32_0 : i32, i32
  }
  func.func @transform_4(%arg0: i32) -> (i32, i32) {
    %c0_i32 = arith.constant 0 : i32
    %c0_i32_0 = arith.constant 0 : i32
    %c0_i32_1 = arith.constant 0 : i32
    return %c0_i32, %c0_i32_0 : i32, i32
  }
  func.func @transform_5(%arg0: i32) -> (i32, i32) {
    %c0_i32 = arith.constant 0 : i32
    %c0_i32_0 = arith.constant 0 : i32
    %c0_i32_1 = arith.constant 0 : i32
    return %c0_i32, %c0_i32_0 : i32, i32
  }
  func.func @transform_6(%arg0: i32) -> (i32, i32) {
    %c0_i32 = arith.constant 0 : i32
    %c0_i32_0 = arith.constant 0 : i32
    %c0_i32_1 = arith.constant 0 : i32
    return %c0_i32, %c0_i32_0 : i32, i32
  }
  func.func @transform_7(%arg0: i32) -> (i32, i32) {
    %c0_i32 = arith.constant 0 : i32
    %c0_i32_0 = arith.constant 0 : i32
    %c0_i32_1 = arith.constant 0 : i32
    return %c0_i32, %c0_i32_0 : i32, i32
  }
}

</mosaic_0001>

<bundles_post_ra>
// kernel: tpu_custom_call.1
= control target key start
LH: loop header
LB: loop body
LE: loop exit
PB: predicated region body
PF: predicated region fallthrough
CT: control target
= control target key end

     0   :  { %s1244_s0 = inlined_call_operand.<no memory space> [shape: s32[1,1], index: 0, kind: input, shape index: {}]   ;;  %s1245_s1 = inlined_call_operand.hbm [shape: f32[128,128], index: 1, kind: input, shape index: {}]   ;;  %s1246_s2 = inlined_call_operand.hbm [shape: f32[128,384], index: 2, kind: input, shape index: {}]   ;;  %s1247_s3 = inlined_call_operand.hbm [shape: f32[128,384], index: 3, kind: input, shape index: {}]   ;;  %s1248_s4 = inlined_call_operand.vmem [shape: f32[1,384], index: 4, kind: input, shape index: {}]   ;;  %s1249_s5 = inlined_call_operand.vmem [shape: f32[1,384], index: 5, kind: input, shape index: {}]   ;;  %s1250_s6 = inlined_call_operand.vmem [shape: f32[1,128], index: 6, kind: input, shape index: {}]   ;;  %s1251_s7 = inlined_call_operand.hbm [shape: f32[1,128], index: 7, kind: output, shape index: {}]  }
   0x1   :  { %v12_v0 = vstv %s1244_s0 }
   0x2   :  { %13 = vst [vmem:[#allocation3] sm:$0x1] %v12_v0 }
   0x3   :  { %14 = vsyncpa [#allocation5], 0 }
   0x4   :  { %15 = vsyncpa [#allocation8], 0 }
   0x5   :  { %16 = vsyncpa [#allocation6], 0  ;;  %s1073_s26 = smov [#allocation7]   ;;  %s979_s30 = scalar_lea.hbm %s1246_s2, 6144 }
   0x6   :  { %s36_s27 = sshll.u32 %s1073_s26, 4  ;;  %p980_p0 = scmp.ne.s32.totalorder %s1246_s2, %s979_s30  ;;  %s37_s27 = int_to_ptr.vmem [resolvable:$true] %s36_s27 }
   0x7   :  { %p983_p1 = scmp.lt.u32.totalorder %s979_s30, %s1246_s2 }
   0x9   :  { %p985_p2 = pnand %p983_p1, %p980_p0 }
   0xb   :  { %988 = shalt.err (!%p985_p2)
}
   0xc   :  { %s989_s0 = scalar_lea.vmem %s37_s27, 6144  ;;  %p994_p4 = scmp.lt.s32.totalorder %s37_s27, %s37_s27 }
   0xd   :  { %p990_p3 = scmp.ne.s32.totalorder %s37_s27, %s989_s0  ;;  %p995_p5 = scmp.lt.s32.totalorder %s989_s0, %s989_s0 }
   0xf   :  { %p996_p6 = por %p995_p5, %p994_p4 }
  0x11   :  { %p997_p7 = pnand %p996_p6, %p990_p3 }
  0x13   :  { %1000 = shalt.err (!%p997_p7)
}
  0x14   :  { %s1074_s12 = smov 384   ;;  %s1075_s13 = smov 24  }
  0x15   :  { %42 = dma.hbm_to_vmem [thread:$0]  %s1246_s2, 6144, %s37_s27, [#allocation8], %s1074_s12, %s1074_s12, %s1075_s13  }
  0x16   :  { %s1076_s16 = smov [#allocation4]   ;;  %s1001_s20 = scalar_lea.hbm %s1245_s1, 2048 }
  0x17   :  { %s24_s17 = sshll.u32 %s1076_s16, 4  ;;  %p1002_p8 = scmp.ne.s32.totalorder %s1245_s1, %s1001_s20  ;;  %s25_s17 = int_to_ptr.vmem [resolvable:$true] %s24_s17 }
  0x18   :  { %p1005_p9 = scmp.lt.u32.totalorder %s1001_s20, %s1245_s1 }
  0x1a   :  { %p1007_p10 = pnand %p1005_p9, %p1002_p8 }
  0x1c   :  { %1010 = shalt.err (!%p1007_p10)
}
  0x1d   :  { %s1011_s25 = scalar_lea.vmem %s25_s17, 2048  ;;  %p1016_p12 = scmp.lt.s32.totalorder %s25_s17, %s25_s17 }
  0x1e   :  { %p1012_p11 = scmp.ne.s32.totalorder %s25_s17, %s1011_s25  ;;  %p1017_p13 = scmp.lt.s32.totalorder %s1011_s25, %s1011_s25 }
  0x20   :  { %p1018_p0 = por %p1017_p13, %p1016_p12 }
  0x22   :  { %p1019_p1 = pnand %p1018_p0, %p1012_p11 }
  0x24   :  { %1022 = shalt.err (!%p1019_p1)
}
  0x25   :  { %s1077_s2 = smov 128   ;;  %s1078_s26 = smov 8  }
  0x26   :  { %30 = dma.hbm_to_vmem [thread:$0]  %s1245_s1, 2048, %s25_s17, [#allocation5], %s1077_s2, %s1077_s2, %s1078_s26  }
  0x27   :  { %s1079_s29 = smov [#allocation9]   ;;  %s1023_s10 = scalar_lea.hbm %s1247_s3, 6144 }
  0x28   :  { %s48_s30 = sshll.u32 %s1079_s29, 4  ;;  %p1024_p2 = scmp.ne.s32.totalorder %s1247_s3, %s1023_s10  ;;  %s49_s30 = int_to_ptr.vmem [resolvable:$true] %s48_s30 }
  0x29   :  { %p1027_p3 = scmp.lt.u32.totalorder %s1023_s10, %s1247_s3 }
  0x2b   :  { %p1029_p4 = pnand %p1027_p3, %p1024_p2 }
  0x2d   :  { %1032 = shalt.err (!%p1029_p4)
}
  0x2e   :  { %s1033_s16 = scalar_lea.vmem %s49_s30, 6144  ;;  %p1038_p6 = scmp.lt.s32.totalorder %s49_s30, %s49_s30 }
  0x2f   :  { %p1034_p5 = scmp.ne.s32.totalorder %s49_s30, %s1033_s16  ;;  %p1039_p7 = scmp.lt.s32.totalorder %s1033_s16, %s1033_s16 }
  0x31   :  { %p1040_p8 = por %p1039_p7, %p1038_p6 }
  0x33   :  { %p1041_p9 = pnand %p1040_p8, %p1034_p5 }
  0x35   :  { %1044 = shalt.err (!%p1041_p9)
}
  0x36   :  { %54 = dma.hbm_to_vmem [thread:$0]  %s1247_s3, 6144, %s49_s30, [#allocation8], %s1074_s12, %s1074_s12, %s1075_s13  }
  0x37   :  { %1067 = dma.done.wait [#allocation5], 2048  }
  0x38   :  { %1068 = vsyncadd [#allocation5], 4294965248 }
  0x39   :  { %1069 = dma.done.wait [#allocation8], 12288  }
  0x3a   :  { %1070 = vsyncadd [#allocation8], 4294955008  ;;  %v1080_v1 = vmov 0   ;;  %v1081_v2 = vmov 0.0|0.0   ;;  %v70_v3 = vld [vmem:[#allocation3] sm:$0x1] }
  0x3b   :  { %968 = vset.pattern.permute.xlu0 %v1080_v1  ;;  %818 = vmatprep.subr.bf16.mxu0 %v1081_v2  ;;  %v83_v4 = vld [vmem:[#allocation4] sm:$0xff]  ;;  %v84_v5 = vld [vmem:[#allocation4 + $0x8] sm:$0xff]  ;;  %v85_v7 = vld [vmem:[#allocation4 + $0x10] sm:$0xff]  ;;  %vm1082_vm0 = vmmov 0   ;;  %v1083_v10 = vmov 0.0  }
  0x3c   :  { %74 = vperm.xlu0 %968, %v70_v3   ;;  %v819_v6 = vpack.c.bf16 %v84_v5, %v83_v4  ;;  %v86_v8 = vld [vmem:[#allocation4 + $0x18] sm:$0xff]  ;;  %745 = vmatprep.mubr.msk.f32.mxu0 %vm1082_vm0, %v1083_v10  ;;  %v87_v11 = vld [vmem:[#allocation4 + $0x20] sm:$0xff]  ;;  %v88_v12 = vld [vmem:[#allocation4 + $0x28] sm:$0xff] }
  0x3d   :  { %v822_v9 = vpack.c.bf16 %v86_v8, %v85_v7  ;;  %298 = vmatprep.mubr.f32.mxu1 %v1083_v10  ;;  %v170_v13 = vld [vmem:[#allocation7 + $0x8] sm:$0xff]  ;;  %v173_v14 = vld [vmem:[#allocation7 + $0x20] sm:$0xff]  ;;  %v172_v16 = vld [vmem:[#allocation7 + $0x18] sm:$0xff]  ;;  %v825_v17 = vpack.c.bf16 %v88_v12, %v87_v11 }
  0x3e   :  { %820 = vmatpush3.bf16.msra.mxu0 %v819_v6  ;;  %v169_v15 = vld [vmem:[#allocation7] sm:$0xff]  ;;  %v89_v18 = vld [vmem:[#allocation4 + $0x30] sm:$0xff]  ;;  %v90_v19 = vld [vmem:[#allocation4 + $0x38] sm:$0xff]  ;;  %v842_v20 = vpack.c.bf16 %v173_v14, %v170_v13 }
  0x3f   :  { %821 = vmatprep.subr.bf16.mxu0 %v1081_v2  ;;  %v844_v21 = vpack.c.bf16 %v172_v16, %v169_v15  ;;  %v176_v22 = vld [vmem:[#allocation7 + $0x38] sm:$0xff]  ;;  %v179_v23 = vld [vmem:[#allocation7 + $0x50] sm:$0xff]  ;;  %v178_v25 = vld [vmem:[#allocation7 + $0x48] sm:$0xff]  ;;  %v828_v30 = vpack.c.bf16 %v90_v19, %v89_v18  ;;  %v71_v15 = vlaneseq }
  0x40   :  { %v175_v24 = vld [vmem:[#allocation7 + $0x30] sm:$0xff]  ;;  %843 = vmatprep.subr.bf16.mxu1 %v842_v20  ;;  %v846_v26 = vpack.c.bf16 %v179_v23, %v176_v22  ;;  %v182_v27 = vld [vmem:[#allocation7 + $0x68] sm:$0xff]  ;;  %v185_v29 = vld [vmem:[#allocation7 + $0x80] sm:$0xff] }
  0x41   :  { %845 = vmatpush1.bf16.msra.mxu1 %v844_v21  ;;  %v848_v28 = vpack.c.bf16 %v178_v25, %v175_v24  ;;  %v850_v31 = vpack.c.bf16 %v185_v29, %v182_v27  ;;  %v181_v32 = vld [vmem:[#allocation7 + $0x60] sm:$0xff]  ;;  %v184_v33 = vld [vmem:[#allocation7 + $0x78] sm:$0xff]  ;;  %v92_v35 = vld [vmem:[#allocation4 + $0x48] sm:$0xff]  ;;  %v1185_v16 = vshrl.u32 %v71_v15, 7  ;;  %v72_v20 = vand.u32 127, %v71_v15 }
  0x42   :  { %823 = vmatpush3.bf16.msra.mxu0 %v822_v9  ;;  %847 = vmatprep.subr.bf16.mxu1 %v846_v26  ;;  %v91_v34 = vld [vmem:[#allocation4 + $0x40] sm:$0xff]  ;;  %v188_v36 = vld [vmem:[#allocation7 + $0x98] sm:$0xff]  ;;  %v191_v37 = vld [vmem:[#allocation7 + $0xb0] sm:$0xff]  ;;  %v852_v38 = vpack.c.bf16 %v184_v33, %v181_v32  ;;  %v1084_v26 = vmov 1.0   ;;  %vm404_vm2 = vcmp.lt.s32.totalorder %v71_v15, 384 }
  0x43   :  { %824 = vmatprep.subr.bf16.mxu0 %v1081_v2  ;;  %v831_v39 = vpack.c.bf16 %v92_v35, %v91_v34  ;;  %v854_v40 = vpack.c.bf16 %v191_v37, %v188_v36  ;;  %v187_v41 = vld [vmem:[#allocation7 + $0x90] sm:$0xff]  ;;  %v190_v42 = vld [vmem:[#allocation7 + $0xa8] sm:$0xff]  ;;  %v94_v44 = vld [vmem:[#allocation4 + $0x58] sm:$0xff] }
  0x44   :  { %v93_v43 = vld [vmem:[#allocation4 + $0x50] sm:$0xff]  ;;  %v194_v45 = vld [vmem:[#allocation7 + $0xc8] sm:$0xff]  ;;  %v197_v46 = vld [vmem:[#allocation7 + $0xe0] sm:$0xff]  ;;  %v856_v47 = vpack.c.bf16 %v190_v42, %v187_v41 }
  0x45   :  { %849 = vmatpush1.bf16.msra.mxu1 %v848_v28  ;;  %v834_v48 = vpack.c.bf16 %v94_v44, %v93_v43  ;;  %v858_v49 = vpack.c.bf16 %v197_v46, %v194_v45  ;;  %v193_v50 = vld [vmem:[#allocation7 + $0xc0] sm:$0xff]  ;;  %v196_v51 = vld [vmem:[#allocation7 + $0xd8] sm:$0xff]  ;;  %v96_v53 = vld [vmem:[#allocation4 + $0x68] sm:$0xff] }
  0x46   :  { %826 = vmatpush3.bf16.msra.mxu0 %v825_v17  ;;  %851 = vmatprep.subr.bf16.mxu1 %v850_v31  ;;  %v95_v52 = vld [vmem:[#allocation4 + $0x60] sm:$0xff]  ;;  %v200_v54 = vld [vmem:[#allocation7 + $0xf8] sm:$0xff]  ;;  %v203_v55 = vld [vmem:[#allocation7 + $0x110] sm:$0xff]  ;;  %v860_v56 = vpack.c.bf16 %v196_v51, %v193_v50  ;;  %v1188_v17 = vsub.s32 0, %v1185_v16 }
  0x47   :  { %827 = vmatprep.subr.bf16.mxu0 %v1081_v2  ;;  %v837_v57 = vpack.c.bf16 %v96_v53, %v95_v52  ;;  %v862_v58 = vpack.c.bf16 %v203_v55, %v200_v54  ;;  %v199_v59 = vld [vmem:[#allocation7 + $0xf0] sm:$0xff]  ;;  %v202_v60 = vld [vmem:[#allocation7 + $0x108] sm:$0xff]  ;;  %v98_v62 = vld [vmem:[#allocation4 + $0x78] sm:$0xff] }
  0x48   :  { %v97_v61 = vld [vmem:[#allocation4 + $0x70] sm:$0xff]  ;;  %v206_v63 = vld [vmem:[#allocation7 + $0x128] sm:$0xff]  ;;  %v209_v0 = vld [vmem:[#allocation7 + $0x140] sm:$0xff]  ;;  %v864_v1 = vpack.c.bf16 %v202_v60, %v199_v59 }
  0x49   :  { %853 = vmatpush1.bf16.msra.mxu1 %v852_v38  ;;  %v840_v3 = vpack.c.bf16 %v98_v62, %v97_v61  ;;  %v866_v4 = vpack.c.bf16 %v209_v0, %v206_v63  ;;  %v205_v5 = vld [vmem:[#allocation7 + $0x120] sm:$0xff]  ;;  %v208_v6 = vld [vmem:[#allocation7 + $0x138] sm:$0xff]  ;;  %v215_v8 = vld [vmem:[#allocation7 + $0x170] sm:$0xff] }
  0x4a   :  { %829 = vmatpush3.bf16.msra.mxu0 %v828_v30  ;;  %855 = vmatprep.subr.bf16.mxu1 %v854_v40  ;;  %v212_v7 = vld [vmem:[#allocation7 + $0x158] sm:$0xff]  ;;  %v868_v9 = vpack.c.bf16 %v208_v6, %v205_v5  ;;  %v211_v12 = vld [vmem:[#allocation7 + $0x150] sm:$0xff]  ;;  %v214_v13 = vld [vmem:[#allocation7 + $0x168] sm:$0xff] }
  0x4b   :  { %830 = vmatprep.subr.bf16.mxu0 %v1081_v2  ;;  %v870_v11 = vpack.c.bf16 %v215_v8, %v212_v7  ;;  %v872_v14 = vpack.c.bf16 %v214_v13, %v211_v12  ;;  %v171_v18 = vld [vmem:[#allocation7 + $0x10] sm:$0xff]  ;;  %v174_v19 = vld [vmem:[#allocation7 + $0x28] sm:$0xff]  ;;  %v177_v24 = vld [vmem:[#allocation7 + $0x40] sm:$0xff] }
  0x4c   :  { %v875_v23 = vpack.c.bf16 %v174_v19, %v171_v18  ;;  %v180_v25 = vld [vmem:[#allocation7 + $0x58] sm:$0xff]  ;;  %v183_v28 = vld [vmem:[#allocation7 + $0x70] sm:$0xff]  ;;  %v186_v29 = vld [vmem:[#allocation7 + $0x88] sm:$0xff] }
  0x4d   :  { %857 = vmatpush1.bf16.msra.mxu1 %v856_v47  ;;  %v878_v27 = vpack.c.bf16 %v180_v25, %v177_v24  ;;  %v881_v30 = vpack.c.bf16 %v186_v29, %v183_v28  ;;  %v189_v31 = vld [vmem:[#allocation7 + $0xa0] sm:$0xff]  ;;  %v192_v32 = vld [vmem:[#allocation7 + $0xb8] sm:$0xff]  ;;  %v195_v34 = vld [vmem:[#allocation7 + $0xd0] sm:$0xff] }
  0x4e   :  { %832 = vmatpush3.bf16.msra.mxu0 %v831_v39  ;;  %859 = vmatprep.subr.bf16.mxu1 %v858_v49  ;;  %v884_v33 = vpack.c.bf16 %v192_v32, %v189_v31  ;;  %v198_v35 = vld [vmem:[#allocation7 + $0xe8] sm:$0xff]  ;;  %v201_v37 = vld [vmem:[#allocation7 + $0x100] sm:$0xff]  ;;  %v204_v38 = vld [vmem:[#allocation7 + $0x118] sm:$0xff] }
  0x4f   :  { %833 = vmatprep.subr.bf16.mxu0 %v1081_v2  ;;  %v887_v36 = vpack.c.bf16 %v198_v35, %v195_v34  ;;  %v890_v39 = vpack.c.bf16 %v204_v38, %v201_v37  ;;  %v207_v40 = vld [vmem:[#allocation7 + $0x130] sm:$0xff]  ;;  %v210_v41 = vld [vmem:[#allocation7 + $0x148] sm:$0xff]  ;;  %v213_v43 = vld [vmem:[#allocation7 + $0x160] sm:$0xff] }
  0x50   :  { %v893_v42 = vpack.c.bf16 %v210_v41, %v207_v40  ;;  %v216_v44 = vld [vmem:[#allocation7 + $0x178] sm:$0xff]  ;;  %v408_v46 = vld [vmem:[#allocation9 + $0x8] sm:$0xff]  ;;  %v411_v47 = vld [vmem:[#allocation9 + $0x20] sm:$0xff] }
  0x51   :  { %861 = vmatpush1.bf16.msra.mxu1 %v860_v56  ;;  %v896_v45 = vpack.c.bf16 %v216_v44, %v213_v43  ;;  %v407_v49 = vld [vmem:[#allocation9] sm:$0xff]  ;;  %v410_v50 = vld [vmem:[#allocation9 + $0x18] sm:$0xff]  ;;  %v409_v51 = vld [vmem:[#allocation9 + $0x10] sm:$0xff] }
  0x52   :  { %835 = vmatpush3.bf16.msra.mxu0 %v834_v48  ;;  %863 = vmatprep.subr.bf16.mxu1 %v862_v58  ;;  %v898_v48 = vpack.c.bf16 %v411_v47, %v408_v46  ;;  %v412_v52 = vld [vmem:[#allocation9 + $0x28] sm:$0xff]  ;;  %v414_v53 = vld [vmem:[#allocation9 + $0x38] sm:$0xff]  ;;  %v417_v54 = vld [vmem:[#allocation9 + $0x50] sm:$0xff]  ;;  %v900_v55 = vpack.c.bf16 %v410_v50, %v407_v49 }
  0x53   :  { %836 = vmatprep.subr.bf16.mxu0 %v1081_v2  ;;  %v413_v56 = vld [vmem:[#allocation9 + $0x30] sm:$0xff]  ;;  %v902_v58 = vpack.c.bf16 %v417_v54, %v414_v53  ;;  %v416_v59 = vld [vmem:[#allocation9 + $0x48] sm:$0xff]  ;;  %v415_v60 = vld [vmem:[#allocation9 + $0x40] sm:$0xff] }
  0x54   :  { %v418_v61 = vld [vmem:[#allocation9 + $0x58] sm:$0xff]  ;;  %v420_v63 = vld [vmem:[#allocation9 + $0x68] sm:$0xff]  ;;  %v423_v0 = vld [vmem:[#allocation9 + $0x80] sm:$0xff] }
  0x55   :  { %865 = vmatpush1.bf16.msra.mxu1 %v864_v1  ;;  %v934_v5 = vpack.c.bf16 %v418_v61, %v415_v60  ;;  %v906_v6 = vpack.c.bf16 %v423_v0, %v420_v63  ;;  %v422_v7 = vld [vmem:[#allocation9 + $0x78] sm:$0xff]  ;;  %v421_v8 = vld [vmem:[#allocation9 + $0x70] sm:$0xff]  ;;  %v435_v24 = vld [vmem:[#allocation9 + $0xe0] sm:$0xff]  ;;  %v1085_v63 = vmov 1966171168  }
  0x56   :  { %838 = vmatpush3.bf16.msra.mxu0 %v837_v57  ;;  %867 = vmatprep.subr.bf16.mxu1 %v866_v4  ;;  %v931_v57 = vpack.c.bf16 %v412_v52, %v409_v51  ;;  %v419_v4 = vld [vmem:[#allocation9 + $0x60] sm:$0xff]  ;;  %v429_v12 = vld [vmem:[#allocation9 + $0xb0] sm:$0xff]  ;;  %v434_v28 = vld [vmem:[#allocation9 + $0xd8] sm:$0xff]  ;;  %v380_v0 = vunpack.c.l.s4 %v1085_v63 }
  0x57   :  { %839 = vmatprep.subr.bf16.mxu0 %v1081_v2  ;;  %v908_v13 = vpack.c.bf16 %v422_v7, %v419_v4  ;;  %v433_v29 = vld [vmem:[#allocation9 + $0xd0] sm:$0xff]  ;;  %v438_v31 = vld [vmem:[#allocation9 + $0xf8] sm:$0xff]  ;;  %v440_v37 = vld [vmem:[#allocation9 + $0x108] sm:$0xff] }
  0x58   :  { %v441_v32 = vld [vmem:[#allocation9 + $0x110] sm:$0xff]  ;;  %v439_v38 = vld [vmem:[#allocation9 + $0x100] sm:$0xff]  ;;  %v444_v40 = vld [vmem:[#allocation9 + $0x128] sm:$0xff]  ;;  %v381_v4 = vunpack.c.0.s8 %v380_v0 }
  0x59   :  { %869 = vmatpush1.bf16.msra.mxu1 %v868_v9  ;;  %v424_v9 = vld [vmem:[#allocation9 + $0x88] sm:$0xff]  ;;  %v437_v34 = vld [vmem:[#allocation9 + $0xf0] sm:$0xff]  ;;  %v447_v41 = vld [vmem:[#allocation9 + $0x140] sm:$0xff] }
  0x5a   :  { %841 = vmatpush3.bf16.msra.mxu0 %v840_v3  ;;  %871 = vmatprep.subr.bf16.mxu1 %v870_v11  ;;  %v904_v3 = vpack.c.bf16 %v416_v59, %v413_v56  ;;  %v426_v11 = vld [vmem:[#allocation9 + $0x98] sm:$0xff]  ;;  %v937_v18 = vpack.c.bf16 %v424_v9, %v421_v8  ;;  %v443_v43 = vld [vmem:[#allocation9 + $0x120] sm:$0xff]  ;;  %v445_v47 = vld [vmem:[#allocation9 + $0x130] sm:$0xff] }
  0x5b   :  { %874 = vmatprep.subr.bf16.mxu0 %v1081_v2  ;;  %v910_v19 = vpack.c.bf16 %v429_v12, %v426_v11  ;;  %v446_v46 = vld [vmem:[#allocation9 + $0x138] sm:$0xff]  ;;  %v453_v50 = vld [vmem:[#allocation9 + $0x170] sm:$0xff]  ;;  %v451_v56 = vld [vmem:[#allocation9 + $0x160] sm:$0xff] }
  0x5c   :  { %v450_v49 = vld [vmem:[#allocation9 + $0x158] sm:$0xff]  ;;  %v924_v51 = vpack.c.bf16 %v446_v46, %v443_v43  ;;  %v449_v52 = vld [vmem:[#allocation9 + $0x150] sm:$0xff] }
  0x5d   :  { %873 = vmatpush1.bf16.msra.mxu1 %v872_v14  ;;  %v425_v14 = vld [vmem:[#allocation9 + $0x90] sm:$0xff]  ;;  %v926_v54 = vpack.c.bf16 %v453_v50, %v450_v49  ;;  %v1215_v60 = vld [vmem:[%s1250_s6] sm:$0x1] }
  0x5e   :  { %899 = vmatprep.subr.bf16.mxu1 %v898_v48  ;;  %v448_v48 = vld [vmem:[#allocation9 + $0x148] sm:$0xff]  ;;  %v217_v61 = vld [vmem:[%s1248_s4] sm:$0x7] }
  0x5f   :  { %v949_v53 = vpack.c.bf16 %v448_v48, %v445_v47 }
  0xbb   :  { %v75_v21 = vpop.permute.xlu0 %74 }
  0xbc   :  { %v79_v22 = vrot.slane %v75_v21, %v1188_v17  ;;  %v427_v21 = vld [vmem:[#allocation9 + $0xa0] sm:$0xff] }
  0xbe   :  { %vm80_vm1 = vcmp.eq.s32.totalorder %v79_v22, %v72_v20  ;;  %v428_v20 = vld [vmem:[#allocation9 + $0xa8] sm:$0xff]  ;;  %v430_v22 = vld [vmem:[#allocation9 + $0xb8] sm:$0xff] }
  0xbf   :  { %746 = vmatmul.mubr.msk.f32.vlgmr.msra.gmra.mrb[0].mxu0 %vm80_vm1, %v1084_v26  ;;  %v912_v25 = vpack.c.bf16 %v428_v20, %v425_v14  ;;  %v431_v26 = vld [vmem:[#allocation9 + $0xc0] sm:$0xff] }
  0xc0   :  { %876 = vmatpush3.bf16.msra.mxu0 %v875_v23  ;;  %780 = vmatprep.mubr.msk.f32.mxu0 %vm1082_vm0, %v1083_v10  ;;  %v432_v23 = vld [vmem:[#allocation9 + $0xc8] sm:$0xff] }
  0xc1   :  { %877 = vmatprep.subr.bf16.mxu0 %v1081_v2 }
  0xc4   :  { %879 = vmatpush3.bf16.msra.mxu0 %v878_v27  ;;  %v940_v27 = vpack.c.bf16 %v430_v22, %v427_v21 }
  0xc5   :  { %880 = vmatprep.subr.bf16.mxu0 %v1081_v2 }
  0xc8   :  { %882 = vmatpush3.bf16.msra.mxu0 %v881_v30  ;;  %v436_v30 = vld [vmem:[#allocation9 + $0xe8] sm:$0xff] }
  0xc9   :  { %883 = vmatprep.subr.bf16.mxu0 %v1081_v2  ;;  %v943_v35 = vpack.c.bf16 %v436_v30, %v433_v29 }
  0xcc   :  { %885 = vmatpush3.bf16.msra.mxu0 %v884_v33  ;;  %v916_v33 = vpack.c.bf16 %v434_v28, %v431_v26 }
  0xcd   :  { %886 = vmatprep.subr.bf16.mxu0 %v1081_v2 }
  0xd0   :  { %888 = vmatpush3.bf16.msra.mxu0 %v887_v36  ;;  %v918_v36 = vpack.c.bf16 %v441_v32, %v438_v31 }
  0xd1   :  { %889 = vmatprep.subr.bf16.mxu0 %v1081_v2 }
  0xd4   :  { %891 = vmatpush3.bf16.msra.mxu0 %v890_v39  ;;  %v442_v39 = vld [vmem:[#allocation9 + $0x118] sm:$0xff] }
  0xd5   :  { %892 = vmatprep.subr.bf16.mxu0 %v1081_v2  ;;  %v946_v44 = vpack.c.bf16 %v442_v39, %v439_v38 }
  0xd8   :  { %894 = vmatpush3.bf16.msra.mxu0 %v893_v42  ;;  %v920_v42 = vpack.c.bf16 %v440_v37, %v437_v34 }
  0xd9   :  { %895 = vmatprep.subr.bf16.mxu0 %v1081_v2 }
  0xdc   :  { %897 = vmatpush3.bf16.msra.mxu0 %v896_v45  ;;  %v922_v45 = vpack.c.bf16 %v447_v41, %v444_v40 }
  0xdd   :  { %930 = vmatprep.subr.bf16.mxu0 %v1081_v2 }
 0x192   :  { %v165_v62 = vpop.f32.mrb[0].mxu0 }
 0x193   :  { %v747_v1 = vpop.f32.mrb[1].mxu0  ;;  %299 = vmatmul.mubr.f32.vlgmr.msra.gmra.mrb[0].mxu1 %v165_v62  ;;  %781 = vmatmul.mubr.f32.vlgmr.msra.gmra.mrb[2].mxu0 %v165_v62  ;;  %v229_v62 = vsub.s32 2, %v1185_v16 }
 0x194   :  { %901 = vmatpush1.bf16.msra.mxu1 %v900_v55  ;;  %932 = vmatpush3.bf16.msra.mxu0 %v931_v57  ;;  %v452_v55 = vld [vmem:[#allocation9 + $0x168] sm:$0xff]  ;;  %v454_v57 = vld [vmem:[#allocation9 + $0x178] sm:$0xff]  ;;  %v222_v1 = vrot.slane %v217_v61, %v1188_v17 }
 0x195   :  { %903 = vmatprep.subr.bf16.mxu1 %v902_v58  ;;  %538 = vmatprep.mubr.f32.mxu1 %v1083_v10  ;;  %v928_v58 = vpack.c.bf16 %v452_v55, %v449_v52  ;;  %v952_v59 = vpack.c.bf16 %v454_v57, %v451_v56 }
 0x196   :  { %933 = vmatprep.subr.bf16.mxu0 %v1081_v2  ;;  %815 = vmatprep.mubr.msk.f32.mxu0 %vm1082_vm0, %v1083_v10  ;;  %v914_v10 = vpack.c.bf16 %v435_v24, %v432_v23  ;;  %v455_v23 = vld [vmem:[%s1249_s5] sm:$0x7]  ;;  %s1086_s5 = smov [#allocation10]  }
 0x197   :  { %v462_v24 = vrot.slane %v455_v23, %v1188_v17  ;;  %v470_v37 = vrot.slane %v455_v23, %v229_v62  ;;  %s648_s19 = sshll.u32 %s1086_s5, 4  ;;  %s649_s19 = int_to_ptr.vmem [resolvable:$true] %s648_s19 }
 0x198   :  { %905 = vmatpush1.bf16.msra.mxu1 %v904_v3  ;;  %935 = vmatpush3.bf16.msra.mxu0 %v934_v5  ;;  %v230_v3 = vrot.slane %v217_v61, %v229_v62  ;;  %s1045_s20 = scalar_lea.vmem %s649_s19, 16  ;;  %s1049_s21 = scalar_lea.vmem %s649_s19, 32 }
 0x199   :  { %907 = vmatprep.subr.bf16.mxu1 %v906_v6  ;;  %936 = vmatprep.subr.bf16.mxu0 %v1081_v2  ;;  %p1046_p10 = scmp.ne.s32.totalorder %s649_s19, %s1045_s20  ;;  %p1050_p11 = scmp.lt.s32.totalorder %s649_s19, %s649_s19 }
 0x19a   :  { %p1051_p12 = scmp.lt.s32.totalorder %s1049_s21, %s1045_s20 }
 0x19c   :  { %909 = vmatpush1.bf16.msra.mxu1 %v908_v13  ;;  %938 = vmatpush3.bf16.msra.mxu0 %v937_v18  ;;  %v384_v13 = vsub.s32 %v381_v4, %v1185_v16  ;;  %p1052_p13 = por %p1051_p12, %p1050_p11 }
 0x19d   :  { %911 = vmatprep.subr.bf16.mxu1 %v910_v19  ;;  %939 = vmatprep.subr.bf16.mxu0 %v1081_v2 }
 0x19e   :  { %p1053_p0 = pnand %p1052_p13, %p1046_p10 }
 0x1a0   :  { %913 = vmatpush1.bf16.msra.mxu1 %v912_v25  ;;  %941 = vmatpush3.bf16.msra.mxu0 %v940_v27 }
 0x1a1   :  { %915 = vmatprep.subr.bf16.mxu1 %v914_v10  ;;  %942 = vmatprep.subr.bf16.mxu0 %v1081_v2 }
 0x1a4   :  { %917 = vmatpush1.bf16.msra.mxu1 %v916_v33  ;;  %944 = vmatpush3.bf16.msra.mxu0 %v943_v35 }
 0x1a5   :  { %919 = vmatprep.subr.bf16.mxu1 %v918_v36  ;;  %945 = vmatprep.subr.bf16.mxu0 %v1081_v2 }
 0x1a8   :  { %921 = vmatpush1.bf16.msra.mxu1 %v920_v42  ;;  %947 = vmatpush3.bf16.msra.mxu0 %v946_v44 }
 0x1a9   :  { %923 = vmatprep.subr.bf16.mxu1 %v922_v45  ;;  %948 = vmatprep.subr.bf16.mxu0 %v1081_v2 }
 0x1ac   :  { %925 = vmatpush1.bf16.msra.mxu1 %v924_v51  ;;  %950 = vmatpush3.bf16.msra.mxu0 %v949_v53 }
 0x1ad   :  { %927 = vmatprep.subr.bf16.mxu1 %v926_v54  ;;  %951 = vmatprep.subr.bf16.mxu0 %v1081_v2  ;;  %v225_v2 = vsub.s32 1, %v1185_v16 }
 0x1af   :  { %v226_v5 = vrot.slane %v217_v61, %v225_v2  ;;  %v466_v25 = vrot.slane %v455_v23, %v225_v2 }
 0x1b0   :  { %929 = vmatpush1.bf16.msra.mxu1 %v928_v58  ;;  %953 = vmatpush3.bf16.msra.mxu0 %v952_v59 }
 0x1b3   :  { %539 = vmatmul.mubr.f32.vlgmr.msra.gmra.mrb[2].mxu1 %v1215_v60  ;;  %816 = vmatmul.mubr.f32.vlgmr.msra.gmra.mrb[4].mxu0 %v1215_v60 }
 0x266   :  { %v300_v6 = vpop.f32.mrb[0].mxu1  ;;  %v371_v7 = vpop.f32.mrb[2].mxu0 }
 0x267   :  { %v301_v8 = vadd.f32 %v300_v6, %v222_v1  ;;  %v302_v9 = vpop.f32.mrb[1].mxu1  ;;  %v782_v11 = vpop.f32.mrb[3].mxu0  ;;  %v372_v12 = vadd.f32 %v371_v7, %v230_v3 }
 0x268   :  { %v303_v14 = vadd.f32 %v302_v9, %v226_v5 }
 0x269   :  { %v392_v19 = vrot.slane %v372_v12, %v384_v13 }
 0x26a   :  { %v378_v18 = vcombine.low %v301_v8, %v303_v14 }
 0x26c   :  { %v385_v20 = vrot.slane %v378_v18, %v384_v13 }
 0x26e   :  { %v393_v21 = vcombine.low %v385_v20, %v392_v19 }
 0x270   :  { %v400_v22 = vrot.slane %v393_v21, %v384_v13 }
 0x272   :  { %406 = vst.msk [vmem:[#allocation2] sm:$0x7] %vm404_vm2, %v400_v22 }
 0x279   :  { %v457_v10 = vld [vmem:[#allocation2] sm:$0x7] }
 0x27a   :  { %v623_v32 = vrot.slane %v457_v10, 1  ;;  %v633_v42 = vrot.slane %v457_v10, 2 }
 0x286   :  { %v540_v26 = vpop.f32.mrb[2].mxu1  ;;  %v611_v27 = vpop.f32.mrb[4].mxu0 }
 0x287   :  { %v541_v16 = vadd.f32 %v540_v26, %v462_v24  ;;  %v542_v28 = vpop.f32.mrb[3].mxu1  ;;  %v817_v29 = vpop.f32.mrb[5].mxu0  ;;  %v612_v39 = vadd.f32 %v611_v27, %v470_v37 }
 0x288   :  { %v543_v30 = vadd.f32 %v542_v28, %v466_v25 }
 0x289   :  { %v615_v31 = vadd.f32 %v541_v16, %v457_v10 }
 0x28a   :  { %v625_v15 = vadd.f32 %v623_v32, %v543_v30 }
 0x28b   :  { %v660_v33 = vmul.f32 -1.442695, %v615_v31 }
 0x28c   :  { %v661_v34 = vmul.f32 -1.442695, %v625_v15 }
 0x28d   :  { %969 = vpow2.f32 %v660_v33 }
 0x28e   :  { %971 = vpow2.f32 %v661_v34 }
 0x297   :  { %v970_v35 = vpop.eup %969 }
 0x298   :  { %v619_v36 = vadd.f32 1.0, %v970_v35  ;;  %v972_v17 = vpop.eup %971 }
 0x299   :  { %v629_v38 = vadd.f32 1.0, %v972_v17 }
 0x29a   :  { %973 = vrcp.f32 %v619_v36 }
 0x29b   :  { %975 = vrcp.f32 %v629_v38 }
 0x2a4   :  { %v974_v40 = vpop.eup %973 }
 0x2a5   :  { %v632_v41 = vmul.f32 %v974_v40, %v612_v39  ;;  %v976_v44 = vpop.eup %975 }
 0x2a6   :  { %v637_v45 = vsub.f32 1.0, %v976_v44  ;;  %v639_v48 = vmul.f32 %v976_v44, %v1215_v60 }
 0x2a7   :  { %v635_v43 = vadd.f32 %v633_v42, %v632_v41 }
 0x2a9   :  { %977 = vtanh.f32 %v635_v43 }
 0x2b3   :  { %v978_v46 = vpop.eup %977 }
 0x2b4   :  { %v638_v47 = vmul.f32 %v978_v46, %v637_v45 }
 0x2b6   :  { %v640_v49 = vadd.f32 %v639_v48, %v638_v47 }
 0x2b8   :  { %641 = vst [vmem:[#allocation10] sm:$0x1] %v640_v49 }
 0x2b9   :  { %1056 = shalt.err (!%p1053_p0)
}
 0x2ba   :  { %s1057_s24 = scalar_lea.hbm %s1251_s7, 16 }
 0x2bb   :  { %p1058_p1 = scmp.ne.s32.totalorder %s1251_s7, %s1057_s24  ;;  %p1061_p2 = scmp.lt.u32.totalorder %s1057_s24, %s1251_s7 }
 0x2bd   :  { %p1063_p3 = pnand %p1061_p2, %p1058_p1 }
 0x2bf   :  { %1066 = shalt.err (!%p1063_p3)
}
 0x2c0   :  { %651 = dma.vmem_to_hbm [thread:$0]  %s649_s19, 16, %s1251_s7, [#allocation6]  }
 0x2c1   :  { %1071 = dma.done.wait [#allocation6], 16  }
 0x2c2   :  { %1072 = vsyncadd [#allocation6], 4294967280 }
 0x2c3   :  { %655 = vsyncpa [#allocation5], 1 }
 0x2c4   :  { %656 = vsyncpa [#allocation8], 1 }
 0x2c5   :  { %657 = vsyncpa [#allocation6], 1 }

</bundles_post_ra>
